<compile_context>
chip_gen: v5e
topology: v5e:2x2
jax: 0.10.0
libtpu: 0.0.40
codegen_flags: <defaults>
</compile_context>

<pallas_src>
import jax
import jax.numpy as jnp
from jax import lax
from jax.experimental import pallas as pl
from jax.experimental.pallas import tpu as pltpu
import numpy as np


def _remove_lower_tri_kernel(edge_index_ref, attr_t_ref,
                             out_index_ref, out_attr_t_ref, count_ref):
    E = edge_index_ref.shape[1]        # lane-padded total edge count (K of both dots)
    T = out_index_ref.shape[1]         # output-slot tile width (lanes)
    t = pl.program_id(0)

    idx = edge_index_ref[...]                      # (2, E) int32
    src = idx[0:1, :]
    dst = idx[1:2, :]
    keep = src < dst                               # (1, E) bool
    keep_i = keep.astype(jnp.int32)

    # Inclusive prefix sum along the lane axis: Hillis-Steele shift-and-add,
    # ceil(log2(E)) pltpu.roll (XLU) + masked-add (VPU) steps.  Recomputed per
    # slot tile -- O(E log E) per step, negligible next to the routing matmul.
    lane = lax.broadcasted_iota(jnp.int32, (1, E), 1)
    csum = keep_i
    d = 1
    while d < E:
        rolled = pltpu.roll(csum, shift=d, axis=1)       # rolled[i] = csum[(i - d) % E]
        csum = csum + jnp.where(lane >= d, rolled, 0)
        d *= 2

    count = csum[:, E - 1:E]                       # (1, 1) total kept edges (cumsum tail)
    pos = jnp.where(keep, csum - 1, -1)            # (1, E) destination slot, or -1 if dropped

    # One-hot routing slice, built PRE-TRANSPOSED (E_in on sublanes, slots on lanes):
    #   oh_t[e, k] = 1.0  iff  input edge e lands in global output slot t*T + k.
    # Single small (1,E)->(E,1) transpose; no (E,E) iota is ever materialized.
    pos_col = jnp.transpose(pos, (1, 0))                             # (E, 1) int32
    slot_row = lax.broadcasted_iota(jnp.int32, (1, T), 1) + t * T    # (1, T) int32
    oh_t = (pos_col == slot_row).astype(jnp.float32)                 # (E, T)

    # --- exact index routing: 16-bit hi/lo split through the f32 MXU path ---
    hi = (idx >> 16).astype(jnp.float32)            # (2, E)  (ids assumed >= 0)
    lo = (idx & 0xFFFF).astype(jnp.float32)         # (2, E)
    id_payload = jnp.concatenate([hi, lo], axis=0)  # (4, E)
    routed_ids = lax.dot_general(
        id_payload, oh_t,
        dimension_numbers=(((1,), (0,)), ((), ())),  # canonical (M,K) x (K,N)
        preferred_element_type=jnp.float32,
        precision=lax.Precision.HIGHEST)             # (4, T)
    routed_ids = jnp.round(routed_ids).astype(jnp.int32)
    idx_out = routed_ids[0:2, :] * 65536 + routed_ids[2:4, :]        # (2, T) exact int32

    slot = lax.broadcasted_iota(jnp.int32, (2, T), 1) + t * T
    out_index_ref[...] = jnp.where(slot < count, idx_out, -1)

    # --- attr routing: same one-hot, exact f32 copy of kept rows; empty slots are 0 ---
    routed_attr = lax.dot_general(
        attr_t_ref[...], oh_t,
        dimension_numbers=(((1,), (0,)), ((), ())),
        preferred_element_type=jnp.float32,
        precision=lax.Precision.HIGHEST)             # (F, T)
    out_attr_t_ref[...] = routed_attr

    # Each tile writes the (identical) total count into its own lane-dense block.
    count_ref[...] = jnp.broadcast_to(count, (1, 128))


def _round_up(x, m):
    return ((x + m - 1) // m) * m


def remove_lower_triangular_adjacency(edge_index, edge_attr, *, max_edge_tile=512):
    """edge_index: (2, E) int (non-negative node ids), edge_attr: (E, F) float.

    Returns (out_edge_index (2, E) int32, out_edge_attr (E, F) f32, count (1, 1) int32):
    the first `count` columns/rows hold the kept (src < dst) edges in original order;
    the remainder is padded with -1 (indices) / 0 (attrs).
    """
    assert edge_index.ndim == 2 and edge_index.shape[0] == 2
    E = edge_index.shape[1]
    F = edge_attr.shape[1]
    assert edge_attr.shape[0] == E

    # ---- generation-aware tiling / VMEM sizing -------------------------------
    try:
        vmem_cap = int(pltpu.get_tpu_info().vmem_capacity_bytes)   # 64 MiB v7x, 128 MiB v5e/v6e
    except Exception:
        vmem_cap = 64 * 1024 * 1024                                # conservative fallback
    budget = vmem_cap // 2                                         # leave headroom for scratch

    E_lane = max(128, _round_up(E, 128))
    e_tile = max(128, _round_up(min(max_edge_tile, E_lane), 128))

    def footprint(tile):
        in_bytes = 2 * (2 + F) * E_lane * 4          # resident inputs (+ buffering slack)
        oh_bytes = 3 * E_lane * tile * 4             # oh_t slice + compare/broadcast temps
        out_bytes = 2 * (2 + F) * tile * 4 + 2 * 128 * 4   # double-buffered output blocks
        return in_bytes + oh_bytes + out_bytes

    while e_tile > 128 and footprint(e_tile) > budget:
        e_tile //= 2
    E_pad = _round_up(E_lane, e_tile)
    num_tiles = E_pad // e_tile
    vmem_limit = int(min(int(0.8 * vmem_cap),
                         max(2 * footprint(e_tile), 32 * 1024 * 1024)))

    # ---- pad inputs to lane-dense shapes (padded edges: src = dst = 0 -> dropped) ----
    ei = edge_index.astype(jnp.int32)
    ea_t = edge_attr.astype(jnp.float32).T                          # (F, E) lane-dense layout
    pad = E_pad - E
    if pad:
        ei = jnp.pad(ei, ((0, 0), (0, pad)))
        ea_t = jnp.pad(ea_t, ((0, 0), (0, pad)))

    out_index, out_attr_t, count_tiles = pl.pallas_call(
        _remove_lower_tri_kernel,
        out_shape=(
            jax.ShapeDtypeStruct((2, E_pad), jnp.int32),
            jax.ShapeDtypeStruct((F, E_pad), jnp.float32),
            jax.ShapeDtypeStruct((1, 128 * num_tiles), jnp.int32),
        ),
        grid=(num_tiles,),
        in_specs=[
            pl.BlockSpec((2, E_pad), lambda t: (0, 0)),   # full edge_index, resident each step
            pl.BlockSpec((F, E_pad), lambda t: (0, 0)),   # full attr^T, resident each step
        ],
        out_specs=(
            pl.BlockSpec((2, e_tile), lambda t: (0, t)),
            pl.BlockSpec((F, e_tile), lambda t: (0, t)),
            pl.BlockSpec((1, 128), lambda t: (0, t)),
        ),
        compiler_params=pltpu.CompilerParams(
            dimension_semantics=("parallel",),            # slot tiles shard across v7x's 2 TCs
            vmem_limit_bytes=vmem_limit,
        ),
    )(ei, ea_t)

    count = count_tiles[:1, :1]                                     # (1, 1) int32
    # Drop lane padding and restore the (E, F) edge_attr convention (layout plumbing).
    return out_index[:, :E], out_attr_t[:, :E].T, count


if __name__ == "__main__":
    N_NODES = 16
    FEAT = 8
    key = jax.random.PRNGKey(0)

    for E in (128, 100):   # one lane-aligned and one ragged edge count
        k1, k2, key = jax.random.split(key, 3)
        edge_index = jax.random.randint(k1, (2, E), 0, N_NODES, dtype=jnp.int32)
        edge_attr = jax.random.normal(k2, (E, FEAT), dtype=jnp.float32)

        out_index, out_attr, count = remove_lower_triangular_adjacency(edge_index, edge_attr)
        jax.block_until_ready((out_index, out_attr, count))

        # Host-side reference (dynamic shapes are fine in numpy).
        ei = np.asarray(edge_index)
        ea = np.asarray(edge_attr)
        m = ei[0] < ei[1]
        n = int(np.asarray(count)[0, 0])
        assert n == int(m.sum()), (n, int(m.sum()))
        np.testing.assert_array_equal(np.asarray(out_index)[:, :n], ei[:, m])
        np.testing.assert_allclose(np.asarray(out_attr)[:n], ea[m], rtol=1e-6, atol=1e-6)
        np.testing.assert_array_equal(np.asarray(out_index)[:, n:], -1)
        np.testing.assert_array_equal(np.asarray(out_attr)[n:], 0.0)

    print("KERNEL_OK")
</pallas_src>

<mosaic_0001>
module attributes {stable_mosaic.version = 11 : i64} {
  func.func @_remove_lower_tri_kernel(%arg0: i32, %arg1: memref<2x128xi32, #tpu.memory_space<vmem>>, %arg2: memref<8x128xf32, #tpu.memory_space<vmem>>, %arg3: memref<2x128xi32, #tpu.memory_space<vmem>>, %arg4: memref<8x128xf32, #tpu.memory_space<vmem>>, %arg5: memref<1x128xi32, #tpu.memory_space<vmem>>) attributes {dimension_semantics = [#tpu.dimension_semantics<parallel>], iteration_bounds = array<i64: 1>, scalar_prefetch = 0 : i64, scratch_operands = 0 : i64, tpu.core_type = #tpu.core_type<tc>, window_params = [{pipeline_mode = #tpu.pipeline_mode<synchronous>, transform_indices = @transform_0, window_bounds = array<i64: 2, 128>}, {pipeline_mode = #tpu.pipeline_mode<synchronous>, transform_indices = @transform_1, window_bounds = array<i64: 8, 128>}, {transform_indices = @transform_2, window_bounds = array<i64: 2, 128>}, {transform_indices = @transform_3, window_bounds = array<i64: 8, 128>}, {transform_indices = @transform_4, window_bounds = array<i64: 1, 128>}]} {
    %c0 = arith.constant 0 : index
    %c0_0 = arith.constant 0 : index
    %0 = vector.load %arg1[%c0, %c0_0] : memref<2x128xi32, #tpu.memory_space<vmem>>, vector<2x128xi32>
    %1 = vector.extract_strided_slice %0 {offsets = [0, 0], sizes = [1, 128], strides = [1, 1]} : vector<2x128xi32> to vector<1x128xi32>
    %2 = vector.extract_strided_slice %0 {offsets = [1, 0], sizes = [1, 128], strides = [1, 1]} : vector<2x128xi32> to vector<1x128xi32>
    %3 = arith.cmpi slt, %1, %2 : vector<1x128xi32>
    %4 = arith.extui %3 : vector<1x128xi1> to vector<1x128xi32>
    %5 = tpu.iota {dimensions = array<i32: 1>} : vector<1x128xi32>
    %c1_i32 = arith.constant 1 : i32
    %6 = tpu.dynamic_rotate %4 by %c1_i32 dim 1 : vector<1x128xi32>, i32 -> vector<1x128xi32>
    %c1_i32_1 = arith.constant 1 : i32
    %7 = vector.broadcast %c1_i32_1 : i32 to vector<1x128xi32>
    %8 = arith.cmpi sge, %5, %7 : vector<1x128xi32>
    %c0_i32 = arith.constant 0 : i32
    %9 = vector.broadcast %c0_i32 : i32 to vector<1x128xi32>
    %10 = arith.select %8, %6, %9 : vector<1x128xi1>, vector<1x128xi32>
    %11 = arith.addi %4, %10 : vector<1x128xi32>
    %c2_i32 = arith.constant 2 : i32
    %12 = tpu.dynamic_rotate %11 by %c2_i32 dim 1 : vector<1x128xi32>, i32 -> vector<1x128xi32>
    %c2_i32_2 = arith.constant 2 : i32
    %13 = vector.broadcast %c2_i32_2 : i32 to vector<1x128xi32>
    %14 = arith.cmpi sge, %5, %13 : vector<1x128xi32>
    %c0_i32_3 = arith.constant 0 : i32
    %15 = vector.broadcast %c0_i32_3 : i32 to vector<1x128xi32>
    %16 = arith.select %14, %12, %15 : vector<1x128xi1>, vector<1x128xi32>
    %17 = arith.addi %11, %16 : vector<1x128xi32>
    %c4_i32 = arith.constant 4 : i32
    %18 = tpu.dynamic_rotate %17 by %c4_i32 dim 1 : vector<1x128xi32>, i32 -> vector<1x128xi32>
    %c4_i32_4 = arith.constant 4 : i32
    %19 = vector.broadcast %c4_i32_4 : i32 to vector<1x128xi32>
    %20 = arith.cmpi sge, %5, %19 : vector<1x128xi32>
    %c0_i32_5 = arith.constant 0 : i32
    %21 = vector.broadcast %c0_i32_5 : i32 to vector<1x128xi32>
    %22 = arith.select %20, %18, %21 : vector<1x128xi1>, vector<1x128xi32>
    %23 = arith.addi %17, %22 : vector<1x128xi32>
    %c8_i32 = arith.constant 8 : i32
    %24 = tpu.dynamic_rotate %23 by %c8_i32 dim 1 : vector<1x128xi32>, i32 -> vector<1x128xi32>
    %c8_i32_6 = arith.constant 8 : i32
    %25 = vector.broadcast %c8_i32_6 : i32 to vector<1x128xi32>
    %26 = arith.cmpi sge, %5, %25 : vector<1x128xi32>
    %c0_i32_7 = arith.constant 0 : i32
    %27 = vector.broadcast %c0_i32_7 : i32 to vector<1x128xi32>
    %28 = arith.select %26, %24, %27 : vector<1x128xi1>, vector<1x128xi32>
    %29 = arith.addi %23, %28 : vector<1x128xi32>
    %c16_i32 = arith.constant 16 : i32
    %30 = tpu.dynamic_rotate %29 by %c16_i32 dim 1 : vector<1x128xi32>, i32 -> vector<1x128xi32>
    %c16_i32_8 = arith.constant 16 : i32
    %31 = vector.broadcast %c16_i32_8 : i32 to vector<1x128xi32>
    %32 = arith.cmpi sge, %5, %31 : vector<1x128xi32>
    %c0_i32_9 = arith.constant 0 : i32
    %33 = vector.broadcast %c0_i32_9 : i32 to vector<1x128xi32>
    %34 = arith.select %32, %30, %33 : vector<1x128xi1>, vector<1x128xi32>
    %35 = arith.addi %29, %34 : vector<1x128xi32>
    %c32_i32 = arith.constant 32 : i32
    %36 = tpu.dynamic_rotate %35 by %c32_i32 dim 1 : vector<1x128xi32>, i32 -> vector<1x128xi32>
    %c32_i32_10 = arith.constant 32 : i32
    %37 = vector.broadcast %c32_i32_10 : i32 to vector<1x128xi32>
    %38 = arith.cmpi sge, %5, %37 : vector<1x128xi32>
    %c0_i32_11 = arith.constant 0 : i32
    %39 = vector.broadcast %c0_i32_11 : i32 to vector<1x128xi32>
    %40 = arith.select %38, %36, %39 : vector<1x128xi1>, vector<1x128xi32>
    %41 = arith.addi %35, %40 : vector<1x128xi32>
    %c64_i32 = arith.constant 64 : i32
    %42 = tpu.dynamic_rotate %41 by %c64_i32 dim 1 : vector<1x128xi32>, i32 -> vector<1x128xi32>
    %c64_i32_12 = arith.constant 64 : i32
    %43 = vector.broadcast %c64_i32_12 : i32 to vector<1x128xi32>
    %44 = arith.cmpi sge, %5, %43 : vector<1x128xi32>
    %c0_i32_13 = arith.constant 0 : i32
    %45 = vector.broadcast %c0_i32_13 : i32 to vector<1x128xi32>
    %46 = arith.select %44, %42, %45 : vector<1x128xi1>, vector<1x128xi32>
    %47 = arith.addi %41, %46 : vector<1x128xi32>
    %48 = vector.extract_strided_slice %47 {offsets = [0, 127], sizes = [1, 1], strides = [1, 1]} : vector<1x128xi32> to vector<1x1xi32>
    %c1_i32_14 = arith.constant 1 : i32
    %49 = vector.broadcast %c1_i32_14 : i32 to vector<1x128xi32>
    %50 = arith.subi %47, %49 : vector<1x128xi32>
    %c-1_i32 = arith.constant -1 : i32
    %51 = vector.broadcast %c-1_i32 : i32 to vector<1x128xi32>
    %52 = arith.select %3, %50, %51 : vector<1x128xi1>, vector<1x128xi32>
    %53 = tpu.transpose %52, [1, 0] : vector<1x128xi32> -> vector<128x1xi32>
    %54 = tpu.iota {dimensions = array<i32: 1>} : vector<1x128xi32>
    %c128_i32 = arith.constant 128 : i32
    %55 = arith.muli %arg0, %c128_i32 : i32
    %56 = vector.broadcast %55 : i32 to vector<1x128xi32>
    %57 = arith.addi %54, %56 : vector<1x128xi32>
    %58 = vector.broadcast %53 : vector<128x1xi32> to vector<128x128xi32>
    %59 = vector.broadcast %57 : vector<1x128xi32> to vector<128x128xi32>
    %60 = arith.cmpi eq, %58, %59 : vector<128x128xi32>
    %61 = arith.extui %60 : vector<128x128xi1> to vector<128x128xi32>
    %62 = arith.sitofp %61 : vector<128x128xi32> to vector<128x128xf32>
    %c16_i32_15 = arith.constant 16 : i32
    %63 = vector.broadcast %c16_i32_15 : i32 to vector<2x128xi32>
    %64 = arith.shrsi %0, %63 : vector<2x128xi32>
    %65 = arith.sitofp %64 : vector<2x128xi32> to vector<2x128xf32>
    %c65535_i32 = arith.constant 65535 : i32
    %66 = vector.broadcast %c65535_i32 : i32 to vector<2x128xi32>
    %67 = arith.andi %0, %66 : vector<2x128xi32>
    %68 = arith.sitofp %67 : vector<2x128xi32> to vector<2x128xf32>
    %69 = tpu.concatenate %65, %68 in 0 : vector<2x128xf32>, vector<2x128xf32> -> vector<4x128xf32>
    %cst = arith.constant dense<0.000000e+00> : vector<4x128xf32>
    %70 = tpu.matmul %69, %62, %cst {dimension_numbers = #tpu.dot_dimension_numbers<[1], [0], [0], [1], [0, 0, 1, 1], [], []>, precision = #tpu.contract_precision<fp32>} : vector<4x128xf32>, vector<128x128xf32>, vector<4x128xf32> -> vector<4x128xf32>
    %71 = math.roundeven %70 : vector<4x128xf32>
    %72 = arith.fptosi %71 : vector<4x128xf32> to vector<4x128xi32>
    %73 = vector.extract_strided_slice %72 {offsets = [0, 0], sizes = [2, 128], strides = [1, 1]} : vector<4x128xi32> to vector<2x128xi32>
    %c65536_i32 = arith.constant 65536 : i32
    %74 = vector.broadcast %c65536_i32 : i32 to vector<2x128xi32>
    %75 = arith.muli %73, %74 : vector<2x128xi32>
    %76 = vector.extract_strided_slice %72 {offsets = [2, 0], sizes = [2, 128], strides = [1, 1]} : vector<4x128xi32> to vector<2x128xi32>
    %77 = arith.addi %75, %76 : vector<2x128xi32>
    %78 = tpu.iota {dimensions = array<i32: 1>} : vector<2x128xi32>
    %c128_i32_16 = arith.constant 128 : i32
    %79 = arith.muli %arg0, %c128_i32_16 : i32
    %80 = vector.broadcast %79 : i32 to vector<2x128xi32>
    %81 = arith.addi %78, %80 : vector<2x128xi32>
    %82 = vector.broadcast %48 : vector<1x1xi32> to vector<2x128xi32>
    %83 = arith.cmpi slt, %81, %82 : vector<2x128xi32>
    %c-1_i32_17 = arith.constant -1 : i32
    %84 = vector.broadcast %c-1_i32_17 : i32 to vector<2x128xi32>
    %85 = arith.select %83, %77, %84 : vector<2x128xi1>, vector<2x128xi32>
    %c0_18 = arith.constant 0 : index
    %c0_19 = arith.constant 0 : index
    %86 = vector.load %arg3[%c0_18, %c0_19] : memref<2x128xi32, #tpu.memory_space<vmem>>, vector<2x128xi32>
    tpu.vector_store %arg3[%c0_18, %c0_19], %85 {strides = array<i32>} : memref<2x128xi32, #tpu.memory_space<vmem>>, vector<2x128xi32>,
    %c0_20 = arith.constant 0 : index
    %c0_21 = arith.constant 0 : index
    %87 = vector.load %arg2[%c0_20, %c0_21] : memref<8x128xf32, #tpu.memory_space<vmem>>, vector<8x128xf32>
    %cst_22 = arith.constant dense<0.000000e+00> : vector<8x128xf32>
    %88 = tpu.matmul %87, %62, %cst_22 {dimension_numbers = #tpu.dot_dimension_numbers<[1], [0], [0], [1], [0, 0, 1, 1], [], []>, precision = #tpu.contract_precision<fp32>} : vector<8x128xf32>, vector<128x128xf32>, vector<8x128xf32> -> vector<8x128xf32>
    %c0_23 = arith.constant 0 : index
    %c0_24 = arith.constant 0 : index
    %89 = vector.load %arg4[%c0_23, %c0_24] : memref<8x128xf32, #tpu.memory_space<vmem>>, vector<8x128xf32>
    tpu.vector_store %arg4[%c0_23, %c0_24], %88 {strides = array<i32>} : memref<8x128xf32, #tpu.memory_space<vmem>>, vector<8x128xf32>,
    %90 = vector.shape_cast %48 : vector<1x1xi32> to vector<1x1xi32>
    %91 = vector.broadcast %90 : vector<1x1xi32> to vector<1x128xi32>
    %c0_25 = arith.constant 0 : index
    %c0_26 = arith.constant 0 : index
    %92 = vector.load %arg5[%c0_25, %c0_26] : memref<1x128xi32, #tpu.memory_space<vmem>>, vector<1x128xi32>
    tpu.vector_store %arg5[%c0_25, %c0_26], %91 {strides = array<i32>} : memref<1x128xi32, #tpu.memory_space<vmem>>, vector<1x128xi32>,
    return
  }
  func.func @transform_0(%arg0: i32) -> (i32, i32) {
    %c0_i32 = arith.constant 0 : i32
    %c0_i32_0 = arith.constant 0 : i32
    %c0_i32_1 = arith.constant 0 : i32
    return %c0_i32, %c0_i32_0 : i32, i32
  }
  func.func @transform_1(%arg0: i32) -> (i32, i32) {
    %c0_i32 = arith.constant 0 : i32
    %c0_i32_0 = arith.constant 0 : i32
    %c0_i32_1 = arith.constant 0 : i32
    return %c0_i32, %c0_i32_0 : i32, i32
  }
  func.func @transform_2(%arg0: i32) -> (i32, i32) {
    %c0_i32 = arith.constant 0 : i32
    %c0_i32_0 = arith.constant 0 : i32
    return %c0_i32, %arg0 : i32, i32
  }
  func.func @transform_3(%arg0: i32) -> (i32, i32) {
    %c0_i32 = arith.constant 0 : i32
    %c0_i32_0 = arith.constant 0 : i32
    return %c0_i32, %arg0 : i32, i32
  }
  func.func @transform_4(%arg0: i32) -> (i32, i32) {
    %c0_i32 = arith.constant 0 : i32
    %c0_i32_0 = arith.constant 0 : i32
    return %c0_i32, %arg0 : i32, i32
  }
}

</mosaic_0001>

<bundles_post_ra>
// kernel: tpu_custom_call.1
= control target key start
LH: loop header
LB: loop body
LE: loop exit
PB: predicated region body
PF: predicated region fallthrough
CT: control target
= control target key end

     0   :  { %10 = vsyncpa [#allocation3], 0  ;;  %s1986_s0 = inlined_call_operand.hbm [shape: s32[2,128], index: 0, kind: input, shape index: {}]   ;;  %s1987_s1 = inlined_call_operand.hbm [shape: f32[8,128], index: 1, kind: input, shape index: {}]   ;;  %s1988_s2 = inlined_call_operand.hbm [shape: s32[2,128], index: 2, kind: output, shape index: {0}]   ;;  %s1989_s3 = inlined_call_operand.hbm [shape: f32[8,128], index: 3, kind: output, shape index: {1}]   ;;  %s1990_s4 = inlined_call_operand.hbm [shape: s32[1,128], index: 4, kind: output, shape index: {2}]  }
   0x1   :  { %11 = vsyncpa [#allocation6], 0 }
   0x2   :  { %12 = vsyncpa [#allocation4], 0 }
   0x3   :  { %13 = vsyncpa [#allocation9], 0  ;;  %s19_s17 = sshll.u32 %s1986_s0, 4  ;;  %s1241_s18 = smov [#allocation2]   ;;  %s20_s17 = int_to_ptr.hbm [resolvable:$true] %s19_s17 }
   0x4   :  { %s21_s19 = sshll.u32 %s1241_s18, 4  ;;  %s30_s22 = sshll.u32 %s1987_s1, 4  ;;  %s22_s19 = int_to_ptr.vmem [resolvable:$true] %s21_s19  ;;  %s31_s22 = int_to_ptr.hbm [resolvable:$true] %s30_s22 }
   0x5   :  { %24 = dma.hbm_to_vmem [thread:$0]  %s20_s17, 32, %s22_s19, [#allocation3]  }
   0x6   :  { %s1242_s23 = smov [#allocation5]  }
   0x7   :  { %s32_s24 = sshll.u32 %s1242_s23, 4  ;;  %s33_s24 = int_to_ptr.vmem [resolvable:$true] %s32_s24 }
   0x8   :  { %35 = dma.hbm_to_vmem [thread:$0]  %s31_s22, 128, %s33_s24, [#allocation6]  }
   0x9   :  { %1233 = dma.done.wait [#allocation3], 32  }
   0xa   :  { %1234 = vsyncadd [#allocation3], 4294967264 }
   0xb   :  { %1235 = dma.done.wait [#allocation6], 128  }
   0xc   :  { %1236 = vsyncadd [#allocation6], 4294967168  ;;  %v1243_v0 = vmov 0   ;;  %v1288_v1 = vld [vmem:[#allocation2] sm:$0x3]  ;;  %s1244_s0 = smov 1   ;;  %v48_v5 = vlaneseq }
   0xd   :  { %1109 = vset.pattern.permute.xlu0 %v1243_v0  ;;  %1110 = vset.pattern.permute.xlu2 %v1243_v0  ;;  %v45_v2 = vrot.slane %v1288_v1, 1  ;;  %s1245_s1 = smov 2   ;;  %s1246_s25 = smov 4   ;;  %v1251_v46 = vmov 127   ;;  %v1991_v53 = vmov 1.0   ;;  %v1994_v54 = vmov 0.0  }
   0xe   :  { %v1299_v6 = vand.u32 127, %v48_v5  ;;  %s1247_s26 = smov 8   ;;  %s1248_s27 = smov 16  }
   0xf   :  { %vm1292_vm0 = vcmp.lt.s32.totalorder %v1288_v1, %v45_v2  ;;  %s1249_s28 = smov 32   ;;  %s1250_s29 = smov 64  }
  0x10   :  { %v47_v4 = vsel %vm1292_vm0, 1, %v1243_v0  ;;  %2004 = vst [vmem:[#allocation15_spill] sm:$0xff] %v1299_v6  ;;  %vm52_vm1 = vcmp.ge.s32.totalorder %v1299_v6, 1  ;;  %vm57_vm2 = vcmp.ge.s32.totalorder %v1299_v6, 2  ;;  %vm62_vm3 = vcmp.ge.s32.totalorder %v1299_v6, 4  ;;  %s1254_s5 = smov [#allocation7]  }
  0x11   :  { %50 = vrot.lane.b32.xlu0 %v47_v4, %s1244_s0  ;;  %vm67_vm4 = vcmp.ge.s32.totalorder %v1299_v6, 8  ;;  %vm72_vm5 = vcmp.ge.s32.totalorder %v1299_v6, 16  ;;  %vm77_vm6 = vcmp.ge.s32.totalorder %v1299_v6, 32  ;;  %vm82_vm7 = vcmp.ge.s32.totalorder %v1299_v6, 64  ;;  %s931_s6 = sshll.u32 %s1254_s5, 4  ;;  %s933_s9 = sshll.u32 %s1988_s2, 4  ;;  %s932_s6 = int_to_ptr.vmem [resolvable:$true] %s931_s6  ;;  %s934_s9 = int_to_ptr.hbm [resolvable:$true] %s933_s9 }
  0x12   :  { %s1255_s10 = smov [#allocation8]   ;;  %s944_s13 = sshll.u32 %s1989_s3, 4  ;;  %s945_s13 = int_to_ptr.hbm [resolvable:$true] %s944_s13 }
  0x13   :  { %s942_s11 = sshll.u32 %s1255_s10, 4  ;;  %s1256_s14 = smov [#allocation10]   ;;  %s943_s11 = int_to_ptr.vmem [resolvable:$true] %s942_s11 }
  0x14   :  { %s953_s15 = sshll.u32 %s1256_s14, 4  ;;  %s955_s18 = sshll.u32 %s1990_s4, 4  ;;  %s954_s15 = int_to_ptr.vmem [resolvable:$true] %s953_s15  ;;  %s956_s18 = int_to_ptr.hbm [resolvable:$true] %s955_s18 }
  0x83   :  { %v51_v7 = vpop.permute.xlu0 %50 }
  0x84   :  { %v53_v8 = vsel %vm52_vm1, %v51_v7, 0 }
  0x85   :  { %v54_v9 = vadd.s32 %v53_v8, %v47_v4 }
  0x87   :  { %55 = vrot.lane.b32.xlu0 %v54_v9, %s1245_s1 }
  0xf9   :  { %v56_v10 = vpop.permute.xlu0 %55 }
  0xfa   :  { %v58_v11 = vsel %vm57_vm2, %v56_v10, 0 }
  0xfb   :  { %v59_v12 = vadd.s32 %v58_v11, %v54_v9 }
  0xfd   :  { %60 = vrot.lane.b32.xlu1 %v59_v12, %s1246_s25 }
 0x16f   :  { %v61_v13 = vpop.permute.xlu1 %60 }
 0x170   :  { %v63_v14 = vsel %vm62_vm3, %v61_v13, 0 }
 0x171   :  { %v64_v15 = vadd.s32 %v63_v14, %v59_v12 }
 0x173   :  { %65 = vrot.lane.b32.xlu1 %v64_v15, %s1247_s26 }
 0x1e5   :  { %v66_v16 = vpop.permute.xlu1 %65 }
 0x1e6   :  { %v68_v17 = vsel %vm67_vm4, %v66_v16, 0 }
 0x1e7   :  { %v69_v18 = vadd.s32 %v68_v17, %v64_v15 }
 0x1e9   :  { %70 = vrot.lane.b32.xlu2 %v69_v18, %s1248_s27 }
 0x243   :  { %v71_v19 = vpop.permute.xlu2 %70 }
 0x244   :  { %v73_v20 = vsel %vm72_vm5, %v71_v19, 0 }
 0x245   :  { %v74_v21 = vadd.s32 %v73_v20, %v69_v18 }
 0x247   :  { %75 = vrot.lane.b32.xlu2 %v74_v21, %s1249_s28 }
 0x2a1   :  { %v76_v22 = vpop.permute.xlu2 %75 }
 0x2a2   :  { %v78_v23 = vsel %vm77_vm6, %v76_v22, 0  ;;  %vm225_vm6 = vcmask 1041408  }
 0x2a3   :  { %v79_v24 = vadd.s32 %v78_v23, %v74_v21 }
 0x2a5   :  { %80 = vrot.lane.b32.xlu0 %v79_v24, %s1250_s29 }
 0x317   :  { %v81_v25 = vpop.permute.xlu0 %80 }
 0x318   :  { %v83_v26 = vsel %vm82_vm7, %v81_v25, 0 }
 0x319   :  { %v84_v27 = vadd.s32 %v83_v26, %v79_v24 }
 0x31b   :  { %v975_v28 = vadd.s32 4294967295, %v84_v27 }
 0x31d   :  { %v86_v29 = vsel %vm1292_vm0, %v975_v28, 4294967295 }
 0x31e   :  { %87 = vxpose.xlu1.b32.start.end [1/1] (short) %v86_v29, 128 }
 0x371   :  { %1111 = vset.pattern.permute.xlu1 %v1243_v0 }
 0x3c2   :  { %v103_v30 = vpop.trf.xlu1 }
 0x3ca   :  { %v104_v31 = vpop.trf.xlu1 }
 0x3d2   :  { %v105_v32 = vpop.trf.xlu1 }
 0x3da   :  { %v106_v33 = vpop.trf.xlu1 }
 0x3e2   :  { %v107_v34 = vpop.trf.xlu1 }
 0x3ea   :  { %v108_v35 = vpop.trf.xlu1 }
 0x3f0   :  { %132 = vperm.xlu1 %1111, %v106_v33  }
 0x3f2   :  { %v109_v36 = vpop.trf.xlu1 }
 0x3fa   :  { %v110_v37 = vpop.trf.xlu1 }
 0x402   :  { %v111_v38 = vpop.trf.xlu1 }
 0x40a   :  { %v112_v39 = vpop.trf.xlu1 }
 0x40b   :  { %150 = vperm.xlu0 %1109, %v112_v39  }
 0x412   :  { %v113_v40 = vpop.trf.xlu1 }
 0x413   :  { %153 = vperm.xlu2 %1110, %v113_v40   ;;  %v2053_v40 = vld [vmem:[#allocation15_spill] sm:$0xff] }
 0x41a   :  { %v114_v41 = vpop.trf.xlu1 }
 0x41b   :  { %156 = vperm.xlu0 %1109, %v114_v41  }
 0x422   :  { %v115_v42 = vpop.trf.xlu1 }
 0x423   :  { %159 = vperm.xlu2 %1110, %v115_v42  }
 0x42a   :  { %v116_v43 = vpop.trf.xlu1 }
 0x42b   :  { %162 = vperm.xlu2 %1110, %v116_v43  }
 0x432   :  { %v117_v44 = vpop.trf.xlu1 }
 0x433   :  { %165 = vperm.xlu0 %1109, %v117_v44  }
 0x43a   :  { %v118_v45 = vpop.trf.xlu1 }
 0x43b   :  { %144 = vperm.xlu0 %1109, %v110_v37   ;;  %168 = vperm.xlu2 %1110, %v118_v45  }
 0x443   :  { %138 = vperm.xlu0 %1109, %v108_v35   ;;  %147 = vperm.xlu2 %1110, %v111_v38  }
 0x44b   :  { %129 = vperm.xlu0 %1109, %v105_v32   ;;  %141 = vperm.xlu2 %1110, %v109_v36  }
 0x453   :  { %123 = vperm.xlu0 %1109, %v103_v30   ;;  %135 = vperm.xlu2 %1110, %v107_v34  }
 0x45b   :  { %1112 = vset.pattern.permute.xlu0 %v1251_v46  ;;  %126 = vperm.xlu2 %1110, %v104_v31  }
 0x45c   :  { %923 = vperm.xlu0 %1112, %v84_v27  }
 0x462   :  { %v133_v33 = vpop.permute.xlu1 %132 }
 0x463   :  { %572 = vrot.lane.b32.xlu2 %v84_v27, %s1244_s0  ;;  %vm1495_vm3 = vcmp.eq.s32.totalorder %v133_v33, %v1299_v6 }
 0x46d   :  { %v154_v47 = vpop.permute.xlu2 %153 }
 0x46e   :  { %vm1355_vm12 = vcmp.eq.s32.totalorder %v154_v47, %v1299_v6 }
 0x46f   :  { %v986_v13 = vsel %vm1355_vm12, 1.0, %v1994_v54 }
 0x470   :  { %v1412_v20 = vsub.f32 %v986_v13, %v986_v13 }
 0x472   :  { %v1454_v32 = vand.u32 4294901760, %v1412_v20 }
 0x47d   :  { %v160_v48 = vpop.permute.xlu2 %159  ;;  %v151_v50 = vpop.permute.xlu0 %150 }
 0x47e   :  { %vm1341_vm10 = vcmp.eq.s32.totalorder %v160_v48, %v1299_v6  ;;  %vm1365_vm13 = vcmp.eq.s32.totalorder %v151_v50, %v1299_v6  ;;  %v301_v48 = vsub.f32 %v1412_v20, %v1454_v32 }
 0x47f   :  { %v988_v4 = vsel %vm1341_vm10, 1.0, %v1994_v54  ;;  %v985_v19 = vsel %vm1365_vm13, 1.0, %v1994_v54 }
 0x480   :  { %v1377_v12 = vsub.f32 %v988_v4, %v988_v4  ;;  %v1435_v25 = vsub.f32 %v985_v19, %v985_v19  ;;  %v1562_v13 = vand.u32 4294901760, %v301_v48 }
 0x482   :  { %v1419_v22 = vand.u32 4294901760, %v1377_v12  ;;  %v1479_v39 = vand.u32 4294901760, %v1435_v25 }
 0x484   :  { %v289_v36 = vsub.f32 %v1377_v12, %v1419_v22 }
 0x485   :  { %v163_v49 = vpop.permute.xlu2 %162 }
 0x486   :  { %vm1334_vm9 = vcmp.eq.s32.totalorder %v163_v49, %v1299_v6  ;;  %v1512_v47 = vand.u32 4294901760, %v289_v36  ;;  %v220_v49 = vand.u32 65535, %v1288_v1 }
 0x487   :  { %v989_v0 = vsel %vm1334_vm9, 1.0, %v1994_v54 }
 0x488   :  { %v1362_v5 = vsub.f32 %v989_v0, %v989_v0 }
 0x48a   :  { %v1401_v18 = vand.u32 4294901760, %v1362_v5 }
 0x48c   :  { %v283_v27 = vsub.f32 %v1362_v5, %v1401_v18 }
 0x48d   :  { %v157_v59 = vpop.permute.xlu0 %156 }
 0x48e   :  { %vm1350_vm11 = vcmp.eq.s32.totalorder %v157_v59, %v1299_v6  ;;  %v1488_v41 = vand.u32 4294901760, %v283_v27  ;;  %v979_v59 = vsel %vm1495_vm3, 1.0, %v1994_v54 }
 0x48f   :  { %v987_v10 = vsel %vm1350_vm11, 1.0, %v1994_v54 }
 0x490   :  { %v1398_v17 = vsub.f32 %v987_v10, %v987_v10 }
 0x492   :  { %v1443_v28 = vand.u32 4294901760, %v1398_v17 }
 0x494   :  { %v295_v42 = vsub.f32 %v1398_v17, %v1443_v28 }
 0x495   :  { %v169_v51 = vpop.permute.xlu2 %168 }
 0x496   :  { %vm1312_vm8 = vcmp.eq.s32.totalorder %v169_v51, %v1299_v6  ;;  %v1528_v51 = vand.u32 4294901760, %v295_v42 }
 0x497   :  { %992 = vmatpush.msk.msra.mxu0 %vm1312_vm8, %v1991_v53  ;;  %1008 = vmatpush.msk.msra.mxu3 %vm1312_vm8, %v1991_v53  ;;  %v991_v55 = vsel %vm1312_vm8, 1.0, %v1994_v54 }
 0x498   :  { %v1325_v56 = vsub.f32 %v991_v55, %v991_v55  ;;  %v307_v55 = vsub.f32 %v1435_v25, %v1479_v39 }
 0x49a   :  { %371 = vmatpush.msra.mxu2 %v1325_v56  ;;  %v1329_v57 = vand.u32 4294901760, %v1325_v56 }
 0x49c   :  { %v271_v58 = vsub.f32 %v1325_v56, %v1329_v57 }
 0x49d   :  { %v148_v60 = vpop.permute.xlu2 %147 }
 0x49e   :  { %v1338_v62 = vand.u32 4294901760, %v271_v58  ;;  %vm1383_vm15 = vcmp.eq.s32.totalorder %v148_v60, %v1299_v6  ;;  %v218_v60 = vshra.s32 %v1288_v1, 16 }
 0x49f   :  { %v984_v23 = vsel %vm1383_vm15, 1.0, %v1994_v54 }
 0x4a0   :  { %273 = vmatpush.msra.mxu1 %v1338_v62  ;;  %v1451_v31 = vsub.f32 %v984_v23, %v984_v23  ;;  %v1575_v23 = vsub.f32 %v979_v59, %v979_v59  ;;  %v219_v48 = vcvt.s32.f32 %v218_v60 }
 0x4a2   :  { %2023 = vst [vmem:[#allocation16_spill] sm:$0xff] %v1451_v31  ;;  %v1508_v46 = vand.u32 4294901760, %v1451_v31 }
 0x4a3   :  { %2037 = vst [vmem:[#allocation20_spill] sm:$0xff] %v1575_v23 }
 0x4a5   :  { %v166_v8 = vpop.permute.xlu0 %165  ;;  %v142_v9 = vpop.permute.xlu2 %141 }
 0x4a6   :  { %vm1373_vm14 = vcmp.eq.s32.totalorder %v166_v8, %v1299_v6  ;;  %vm1425_vm0 = vcmp.eq.s32.totalorder %v142_v9, %v1299_v6  ;;  %v313_v8 = vsub.f32 %v1451_v31, %v1508_v46 }
 0x4a7   :  { %993 = vmatpush.msk.msra.mxu0 %vm1373_vm14, %v1991_v53  ;;  %1009 = vmatpush.msk.msra.mxu3 %vm1373_vm14, %v1991_v53  ;;  %v990_v15 = vsel %vm1373_vm14, 1.0, %v1994_v54  ;;  %v982_v37 = vsel %vm1425_vm0, 1.0, %v1994_v54 }
 0x4a8   :  { %v1396_v16 = vsub.f32 %v990_v15, %v990_v15  ;;  %v1505_v45 = vsub.f32 %v982_v37, %v982_v37  ;;  %v1591_v33 = vand.u32 4294901760, %v313_v8 }
 0x4a9   :  { %994 = vmatpush.msk.msra.mxu0 %vm1334_vm9, %v1991_v53  ;;  %1010 = vmatpush.msk.msra.mxu3 %vm1334_vm9, %v1991_v53 }
 0x4aa   :  { %374 = vmatpush.msra.mxu2 %v1396_v16  ;;  %v1416_v21 = vand.u32 4294901760, %v1396_v16  ;;  %2031 = vst [vmem:[#allocation18_spill] sm:$0xff] %v1505_v45  ;;  %v1548_v9 = vand.u32 4294901760, %v1505_v45  ;;  %v2051_v3 = vld [vmem:[#allocation20_spill] sm:$0xff] }
 0x4ab   :  { %995 = vmatpush.msk.msra.mxu0 %vm1341_vm10, %v1991_v53  ;;  %1011 = vmatpush.msk.msra.mxu3 %vm1341_vm10, %v1991_v53 }
 0x4ac   :  { %377 = vmatpush.msra.mxu2 %v1362_v5  ;;  %v277_v26 = vsub.f32 %v1396_v16, %v1416_v21  ;;  %v325_v36 = vsub.f32 %v1505_v45, %v1548_v9 }
 0x4ad   :  { %v145_v29 = vpop.permute.xlu0 %144  ;;  %996 = vmatpush.msk.msra.mxu0 %vm1350_vm11, %v1991_v53  ;;  %1012 = vmatpush.msk.msra.mxu3 %vm1350_vm11, %v1991_v53  ;;  %v136_v30 = vpop.permute.xlu2 %135 }
 0x4ae   :  { %vm1457_vm1 = vcmp.eq.s32.totalorder %v145_v29, %v1299_v6  ;;  %380 = vmatpush.msra.mxu2 %v1377_v12  ;;  %v1462_v35 = vand.u32 4294901760, %v277_v26  ;;  %vm1482_vm2 = vcmp.eq.s32.totalorder %v136_v30, %v1299_v6  ;;  %v1579_v26 = vand.u32 4294901760, %v307_v55 }
 0x4af   :  { %997 = vmatpush.msk.msra.mxu0 %vm1355_vm12, %v1991_v53  ;;  %1013 = vmatpush.msk.msra.mxu3 %vm1355_vm12, %v1991_v53  ;;  %v983_v38 = vsel %vm1457_vm1, 1.0, %v1994_v54  ;;  %v980_v50 = vsel %vm1482_vm2, 1.0, %v1994_v54  ;;  %v221_v30 = vcvt.s32.f32 %v220_v49 }
 0x4b0   :  { %279 = vmatpush.msra.mxu1 %v1462_v35  ;;  %383 = vmatpush.msra.mxu2 %v1398_v17  ;;  %v1492_v43 = vsub.f32 %v983_v38, %v983_v38  ;;  %v1564_v15 = vsub.f32 %v980_v50, %v980_v50  ;;  %v1613_v50 = vand.u32 4294901760, %v1575_v23 }
 0x4b1   :  { %998 = vmatpush.msk.msra.mxu0 %vm1365_vm13, %v1991_v53  ;;  %1014 = vmatpush.msk.msra.mxu3 %vm1365_vm13, %v1991_v53  ;;  %v223_v49 = vrot.slane %v221_v30, 6  ;;  %v1638_v30 = vand.u32 4294901760, %v325_v36 }
 0x4b2   :  { %2028 = vst [vmem:[#allocation17_spill] sm:$0xff] %v1492_v43  ;;  %285 = vmatpush.msra.mxu1 %v1488_v41  ;;  %386 = vmatpush.msra.mxu2 %v1412_v20  ;;  %v1533_v58 = vand.u32 4294901760, %v1492_v43  ;;  %v1604_v42 = vand.u32 4294901760, %v1564_v15 }
 0x4b3   :  { %999 = vmatpush.msk.msra.mxu0 %vm1383_vm15, %v1991_v53  ;;  %1015 = vmatpush.msk.msra.mxu3 %vm1383_vm15, %v1991_v53  ;;  %2036 = vst [vmem:[#allocation19_spill] sm:$0xff] %v1564_v15 }
 0x4b4   :  { %291 = vmatpush.msra.mxu1 %v1512_v47  ;;  %389 = vmatpush.msra.mxu2 %v1435_v25  ;;  %v319_v29 = vsub.f32 %v1492_v43, %v1533_v58 }
 0x4b5   :  { %v139_v0 = vpop.permute.xlu0 %138  ;;  %1000 = vmatpush.msk.msra.mxu0 %vm1457_vm1, %v1991_v53  ;;  %1016 = vmatpush.msk.msra.mxu3 %vm1457_vm1, %v1991_v53  ;;  %v127_v4 = vpop.permute.xlu2 %126 }
 0x4b6   :  { %vm1551_vm4 = vcmp.eq.s32.totalorder %v139_v0, %v1299_v6  ;;  %vm1556_vm5 = vcmp.eq.s32.totalorder %v127_v4, %v1299_v6  ;;  %297 = vmatpush.msra.mxu1 %v1528_v51  ;;  %392 = vmatpush.msra.mxu2 %v1451_v31  ;;  %v1617_v55 = vand.u32 4294901760, %v319_v29  ;;  %v226_v0 = vsel %vm225_vm6, %v219_v48, %v223_v49 }
 0x4b7   :  { %1001 = vmatpush.msk.msra.mxu0 %vm1425_vm0, %v1991_v53  ;;  %1017 = vmatpush.msk.msra.mxu3 %vm1425_vm0, %v1991_v53  ;;  %v981_v19 = vsel %vm1551_vm4, 1.0, %v1994_v54  ;;  %v977_v37 = vsel %vm1556_vm5, 1.0, %v1994_v54 }
 0x4b8   :  { %303 = vmatpush.msra.mxu1 %v1562_v13  ;;  %395 = vmatpush.msra.mxu2 %v1492_v43  ;;  %v1581_v27 = vsub.f32 %v981_v19, %v981_v19  ;;  %v1621_v60 = vsub.f32 %v977_v37, %v977_v37  ;;  %v1629_v19 = vand.u32 4294901760, %v226_v0  ;;  %v337_v37 = vsub.f32 %v1564_v15, %v1604_v42 }
 0x4b9   :  { %1002 = vmatpush.msk.msra.mxu0 %vm1551_vm4, %v1991_v53  ;;  %1018 = vmatpush.msk.msra.mxu3 %vm1551_vm4, %v1991_v53 }
 0x4ba   :  { %2038 = vst [vmem:[#allocation21_spill] sm:$0xff] %v1581_v27  ;;  %309 = vmatpush.msra.mxu1 %v1579_v26  ;;  %398 = vmatpush.msra.mxu2 %v1505_v45  ;;  %v1601_v38 = vand.u32 4294901760, %v1581_v27  ;;  %v1652_v49 = vsub.f32 %v226_v0, %v1629_v19  ;;  %v2050_v11 = vld [vmem:[#allocation19_spill] sm:$0xff] }
 0x4bb   :  { %1003 = vmatpush.msk.msra.mxu0 %vm1482_vm2, %v1991_v53  ;;  %1019 = vmatpush.msk.msra.mxu3 %vm1482_vm2, %v1991_v53  ;;  %2039 = vst [vmem:[#allocation22_spill] sm:$0xff] %v1621_v60 }
 0x4bc   :  { %315 = vmatpush.msra.mxu1 %v1591_v33  ;;  %401 = vmatpush.msra.mxu2 %v1581_v27  ;;  %v331_v59 = vsub.f32 %v1581_v27, %v1601_v38 }
 0x4bd   :  { %v130_v4 = vpop.permute.xlu0 %129  ;;  %1004 = vmatpush.msk.msra.mxu0 %vm1495_vm3, %v1991_v53  ;;  %1020 = vmatpush.msk.msra.mxu3 %vm1495_vm3, %v1991_v53  ;;  %v573_v8 = vpop.permute.xlu2 %572 }
 0x4be   :  { %vm1632_vm7 = vcmp.eq.s32.totalorder %v130_v4, %v1299_v6  ;;  %321 = vmatpush.msra.mxu1 %v1617_v55  ;;  %404 = vmatpush.msra.mxu2 %v1564_v15  ;;  %1091 = vpush %v573_v8  ;;  %v1656_v36 = vand.u32 4294901760, %v331_v59  ;;  %v343_v8 = vsub.f32 %v1575_v23, %v1613_v50  ;;  %v2042_v15 = vmov 1.0  }
 0x4bf   :  { %1005 = vmatpush.msk.msra.mxu0 %vm1632_vm7, %v1991_v53  ;;  %1021 = vmatpush.msk.msra.mxu3 %vm1632_vm7, %v1991_v53  ;;  %v978_v48 = vsel %vm1632_vm7, 1.0, %v1994_v54  ;;  %v1663_v53 = vand.u32 4294901760, %v1621_v60  ;;  %v1673_v59 = vand.u32 4294901760, %v337_v37 }
 0x4c0   :  { %327 = vmatpush.msra.mxu1 %v1638_v30  ;;  %407 = vmatpush.msra.mxu2 %v1575_v23  ;;  %v1658_v4 = vsub.f32 %v978_v48, %v978_v48  ;;  %v261_v48 = vand.u32 4294901760, %v1652_v49  ;;  %v1681_v54 = vand.u32 4294901760, %v343_v8 }
 0x4c1   :  { %1006 = vmatpush.msk.msra.mxu0 %vm1556_vm5, %v2042_v15  ;;  %1022 = vmatpush.msk.msra.mxu3 %vm1556_vm5, %v2042_v15  ;;  %v355_v27 = vsub.f32 %v1621_v60, %v1663_v53  ;;  %v2049_v63 = vld [vmem:[#allocation21_spill] sm:$0xff] }
 0x4c2   :  { %333 = vmatpush.msra.mxu1 %v1656_v36  ;;  %410 = vmatpush.msra.mxu2 %v1658_v4  ;;  %v1676_v0 = vand.u32 4294901760, %v1658_v4  ;;  %v262_v37 = vsub.f32 %v1652_v49, %v261_v48 }
 0x4c4   :  { %339 = vmatpush.msra.mxu1 %v1673_v59  ;;  %413 = vmatpush.msra.mxu2 %v1621_v60  ;;  %v349_v23 = vsub.f32 %v1658_v4, %v1676_v0  ;;  %v263_v8 = vand.u32 4294901760, %v262_v37  ;;  %v2045_v60 = vmov 0.0  }
 0x4c5   :  { %v124_v45 = vpop.permute.xlu0 %123 }
 0x4c6   :  { %vm1689_vm6 = vcmp.eq.s32.totalorder %v124_v45, %v1299_v6  ;;  %345 = vmatpush.msra.mxu1 %v1681_v54  ;;  %v1694_v31 = vand.u32 4294901760, %v349_v23  ;;  %v1707_v6 = vand.u32 4294901760, %v355_v27 }
 0x4c7   :  { %1007 = vmatpush.msk.msra.mxu0 %vm1689_vm6, %v2042_v15  ;;  %1023 = vmatpush.msk.msra.mxu3 %vm1689_vm6, %v2042_v15  ;;  %v976_v45 = vsel %vm1689_vm6, 1.0, %v2045_v60 }
 0x4c8   :  { %351 = vmatpush.msra.mxu1 %v1694_v31  ;;  %v1709_v23 = vsub.f32 %v976_v45, %v976_v45  ;;  %264 = vmatmul.f32.vlgmr.msra.gmra.mxu0 %v263_v8 }
 0x4c9   :  { %465 = vmatpush.msrb.mxu0 %v1329_v57  ;;  %626 = vmatpush.msrb.mxu3 %v1338_v62 }
 0x4ca   :  { %357 = vmatpush.msra.mxu1 %v1707_v6  ;;  %416 = vmatpush.msra.mxu2 %v1709_v23  ;;  %v1715_v37 = vand.u32 4294901760, %v1709_v23 }
 0x4cb   :  { %469 = vmatpush.msrb.mxu0 %v1416_v21  ;;  %632 = vmatpush.msrb.mxu3 %v1462_v35 }
 0x4cc   :  { %1040 = vmatpush.msk.msrb.mxu2 %vm1312_vm8, %v2042_v15  ;;  %v361_v27 = vsub.f32 %v1709_v23, %v1715_v37  ;;  %458 = vmatmul.f32.vlgmr.msra.gmra.mxu3 %v261_v48 }
 0x4cd   :  { %473 = vmatpush.msrb.mxu0 %v1401_v18  ;;  %638 = vmatpush.msrb.mxu3 %v1488_v41 }
 0x4ce   :  { %1041 = vmatpush.msk.msrb.mxu2 %vm1373_vm14, %v2042_v15  ;;  %v924_v62 = vpop.permute.xlu0 %923  ;;  %v362_v60 = vand.u32 4294901760, %v361_v27 }
 0x4cf   :  { %925 = vst [vmem:[#allocation10] sm:$0x1] %v924_v62  ;;  %477 = vmatpush.msrb.mxu0 %v1419_v22  ;;  %644 = vmatpush.msrb.mxu3 %v1512_v47 }
 0x4d0   :  { %1042 = vmatpush.msk.msrb.mxu2 %vm1334_vm9, %v2042_v15  ;;  %363 = vmatpush.msra.mxu1 %v362_v60 }
 0x4d1   :  { %481 = vmatpush.msrb.mxu0 %v1443_v28  ;;  %650 = vmatpush.msrb.mxu3 %v1528_v51 }
 0x4d2   :  { %1024 = vmatpush.msk.msrb.mxu1 %vm1312_vm8, %v2042_v15  ;;  %1043 = vmatpush.msk.msrb.mxu2 %vm1341_vm10, %v2042_v15 }
 0x4d3   :  { %485 = vmatpush.msrb.mxu0 %v1454_v32  ;;  %656 = vmatpush.msrb.mxu3 %v1562_v13 }
 0x4d4   :  { %1025 = vmatpush.msk.msrb.mxu1 %vm1373_vm14, %v2042_v15  ;;  %1044 = vmatpush.msk.msrb.mxu2 %vm1350_vm11, %v2042_v15 }
 0x4d5   :  { %489 = vmatpush.msrb.mxu0 %v1479_v39  ;;  %662 = vmatpush.msrb.mxu3 %v1579_v26 }
 0x4d6   :  { %1026 = vmatpush.msk.msrb.mxu1 %vm1334_vm9, %v2042_v15  ;;  %1045 = vmatpush.msk.msrb.mxu2 %vm1355_vm12, %v2042_v15 }
 0x4d7   :  { %493 = vmatpush.msrb.mxu0 %v1508_v46  ;;  %668 = vmatpush.msrb.mxu3 %v1591_v33 }
 0x4d8   :  { %1027 = vmatpush.msk.msrb.mxu1 %vm1341_vm10, %v2042_v15  ;;  %1046 = vmatpush.msk.msrb.mxu2 %vm1365_vm13, %v2042_v15 }
 0x4d9   :  { %497 = vmatpush.msrb.mxu0 %v1533_v58  ;;  %674 = vmatpush.msrb.mxu3 %v1617_v55 }
 0x4da   :  { %1028 = vmatpush.msk.msrb.mxu1 %vm1350_vm11, %v2042_v15  ;;  %1047 = vmatpush.msk.msrb.mxu2 %vm1383_vm15, %v2042_v15 }
 0x4db   :  { %501 = vmatpush.msrb.mxu0 %v1548_v9  ;;  %680 = vmatpush.msrb.mxu3 %v1638_v30 }
 0x4dc   :  { %1029 = vmatpush.msk.msrb.mxu1 %vm1355_vm12, %v2042_v15  ;;  %1048 = vmatpush.msk.msrb.mxu2 %vm1457_vm1, %v2042_v15 }
 0x4dd   :  { %505 = vmatpush.msrb.mxu0 %v1601_v38  ;;  %686 = vmatpush.msrb.mxu3 %v1656_v36 }
 0x4de   :  { %1030 = vmatpush.msk.msrb.mxu1 %vm1365_vm13, %v2042_v15  ;;  %1049 = vmatpush.msk.msrb.mxu2 %vm1425_vm0, %v2042_v15 }
 0x4df   :  { %509 = vmatpush.msrb.mxu0 %v1604_v42  ;;  %692 = vmatpush.msrb.mxu3 %v1673_v59 }
 0x4e0   :  { %1031 = vmatpush.msk.msrb.mxu1 %vm1383_vm15, %v2042_v15  ;;  %1050 = vmatpush.msk.msrb.mxu2 %vm1551_vm4, %v2042_v15 }
 0x4e1   :  { %513 = vmatpush.msrb.mxu0 %v1613_v50  ;;  %698 = vmatpush.msrb.mxu3 %v1681_v54 }
 0x4e2   :  { %1032 = vmatpush.msk.msrb.mxu1 %vm1457_vm1, %v2042_v15  ;;  %1051 = vmatpush.msk.msrb.mxu2 %vm1482_vm2, %v2042_v15 }
 0x4e3   :  { %517 = vmatpush.msrb.mxu0 %v1676_v0  ;;  %704 = vmatpush.msrb.mxu3 %v1694_v31 }
 0x4e4   :  { %1033 = vmatpush.msk.msrb.mxu1 %vm1425_vm0, %v2042_v15  ;;  %1052 = vmatpush.msk.msrb.mxu2 %vm1495_vm3, %v2042_v15 }
 0x4e5   :  { %419 = vmatmul.f32.vlgmr.msra.gmra.mxu2 %v1652_v49  ;;  %521 = vmatpush.msrb.mxu0 %v1663_v53 }
 0x4e6   :  { %710 = vmatpush.msrb.mxu3 %v1707_v6  ;;  %1034 = vmatpush.msk.msrb.mxu1 %vm1551_vm4, %v2042_v15  ;;  %v579_v6 = vld [vmem:[#allocation5] sm:$0xff] }
 0x4e7   :  { %1053 = vmatpush.msk.msrb.mxu2 %vm1632_vm7, %v2042_v15  ;;  %525 = vmatpush.msrb.mxu0 %v1715_v37  ;;  %v612_v54 = vand.u32 4294901760, %v579_v6 }
 0x4e8   :  { %716 = vmatpush.msrb.mxu3 %v362_v60  ;;  %1035 = vmatpush.msk.msrb.mxu1 %vm1482_vm2, %v2042_v15 }
 0x4e9   :  { %1054 = vmatpush.msk.msrb.mxu2 %vm1556_vm5, %v2042_v15  ;;  %724 = vmatpush.msra.mxu0 %v1325_v56  ;;  %v613_v52 = vsub.f32 %v579_v6, %v612_v54  ;;  %v2046_v56 = vld [vmem:[#allocation16_spill] sm:$0xff] }
 0x4ea   :  { %1072 = vmatpush.msk.msra.mxu3 %vm1312_vm8, %v2042_v15  ;;  %365 = vmatmul.f32.vlgmr.msra.gmra.mxu1 %v1629_v19 }
 0x4eb   :  { %1036 = vmatpush.msk.msrb.mxu1 %vm1495_vm3, %v2042_v15  ;;  %1055 = vmatpush.msk.msrb.mxu2 %vm1689_vm6, %v2042_v15  ;;  %v614_v61 = vand.u32 4294901760, %v613_v52 }
 0x4ec   :  { %727 = vmatpush.msra.mxu0 %v1396_v16  ;;  %1073 = vmatpush.msk.msra.mxu3 %vm1373_vm14, %v2042_v15 }
 0x4ed   :  { %818 = vmatpush.msra.mxu2 %v1329_v57  ;;  %1037 = vmatpush.msk.msrb.mxu1 %vm1632_vm7, %v2042_v15  ;;  %v2047_v57 = vld [vmem:[#allocation17_spill] sm:$0xff]  ;;  %v615_v2 = vsub.f32 %v613_v52, %v614_v61 }
 0x4ee   :  { %730 = vmatpush.msra.mxu0 %v1362_v5  ;;  %1074 = vmatpush.msk.msra.mxu3 %vm1334_vm9, %v2042_v15  ;;  %v2048_v5 = vld [vmem:[#allocation18_spill] sm:$0xff] }
 0x4ef   :  { %822 = vmatpush.msra.mxu2 %v1416_v21  ;;  %1038 = vmatpush.msk.msrb.mxu1 %vm1556_vm5, %v2042_v15  ;;  %v616_v7 = vand.u32 4294901760, %v615_v2  ;;  %s1092_s30 = spop %1091 }
 0x4f0   :  { %733 = vmatpush.msra.mxu0 %v1377_v12  ;;  %1075 = vmatpush.msk.msra.mxu3 %vm1341_vm10, %v2042_v15  ;;  %v2052_v12 = vld [vmem:[#allocation22_spill] sm:$0xff] }
 0x4f1   :  { %527 = vmatmul.f32.vlgmr.msrb.gmra.mxu0 %v1629_v19  ;;  %826 = vmatpush.msra.mxu2 %v1401_v18 }
 0x4f2   :  { %1039 = vmatpush.msk.msrb.mxu1 %vm1689_vm6, %v2042_v15  ;;  %736 = vmatpush.msra.mxu0 %v1398_v17 }
 0x4f3   :  { %1076 = vmatpush.msk.msra.mxu3 %vm1350_vm11, %v2042_v15  ;;  %564 = vmatmul.f32.vlgmr.msrb.gmra.mxu1 %v1629_v19 }
 0x4f4   :  { %1056 = vmatpush.msk.msra.mxu1 %vm1312_vm8, %v2042_v15  ;;  %830 = vmatpush.msra.mxu2 %v1419_v22 }
 0x4f5   :  { %739 = vmatpush.msra.mxu0 %v1412_v20  ;;  %1077 = vmatpush.msk.msra.mxu3 %vm1355_vm12, %v2042_v15 }
 0x4f6   :  { %1057 = vmatpush.msk.msra.mxu1 %vm1373_vm14, %v2042_v15  ;;  %834 = vmatpush.msra.mxu2 %v1443_v28 }
 0x4f7   :  { %742 = vmatpush.msra.mxu0 %v1435_v25  ;;  %1078 = vmatpush.msk.msra.mxu3 %vm1365_vm13, %v2042_v15 }
 0x4f8   :  { %1058 = vmatpush.msk.msra.mxu1 %vm1334_vm9, %v2042_v15  ;;  %838 = vmatpush.msra.mxu2 %v1454_v32  ;;  %v575_v32 = vstv %s1092_s30 }
 0x4f9   :  { %745 = vmatpush.msra.mxu0 %v2046_v56  ;;  %1079 = vmatpush.msk.msra.mxu3 %vm1383_vm15, %v2042_v15  ;;  %vm576_vm8 = vcmp.lt.s32.totalorder %v2053_v40, %v575_v32 }
 0x4fa   :  { %1059 = vmatpush.msk.msra.mxu1 %vm1341_vm10, %v2042_v15  ;;  %842 = vmatpush.msra.mxu2 %v1479_v39 }
 0x4fb   :  { %748 = vmatpush.msra.mxu0 %v2047_v57  ;;  %1080 = vmatpush.msk.msra.mxu3 %vm1457_vm1, %v2042_v15 }
 0x4fc   :  { %1060 = vmatpush.msk.msra.mxu1 %vm1350_vm11, %v2042_v15  ;;  %846 = vmatpush.msra.mxu2 %v1508_v46 }
 0x4fd   :  { %751 = vmatpush.msra.mxu0 %v2048_v5  ;;  %1081 = vmatpush.msk.msra.mxu3 %vm1425_vm0, %v2042_v15 }
 0x4fe   :  { %1061 = vmatpush.msk.msra.mxu1 %vm1355_vm12, %v2042_v15  ;;  %850 = vmatpush.msra.mxu2 %v1533_v58 }
 0x4ff   :  { %754 = vmatpush.msra.mxu0 %v2049_v63  ;;  %1082 = vmatpush.msk.msra.mxu3 %vm1551_vm4, %v2042_v15 }
 0x500   :  { %1062 = vmatpush.msk.msra.mxu1 %vm1365_vm13, %v2042_v15  ;;  %854 = vmatpush.msra.mxu2 %v1548_v9 }
 0x501   :  { %757 = vmatpush.msra.mxu0 %v2050_v11  ;;  %1083 = vmatpush.msk.msra.mxu3 %vm1482_vm2, %v2042_v15 }
 0x502   :  { %1063 = vmatpush.msk.msra.mxu1 %vm1383_vm15, %v2042_v15  ;;  %858 = vmatpush.msra.mxu2 %v1601_v38 }
 0x503   :  { %760 = vmatpush.msra.mxu0 %v2051_v3  ;;  %1084 = vmatpush.msk.msra.mxu3 %vm1495_vm3, %v2042_v15 }
 0x504   :  { %1064 = vmatpush.msk.msra.mxu1 %vm1457_vm1, %v2042_v15  ;;  %862 = vmatpush.msra.mxu2 %v1604_v42 }
 0x505   :  { %763 = vmatpush.msra.mxu0 %v1658_v4  ;;  %1085 = vmatpush.msk.msra.mxu3 %vm1632_vm7, %v2042_v15 }
 0x506   :  { %1065 = vmatpush.msk.msra.mxu1 %vm1425_vm0, %v2042_v15  ;;  %866 = vmatpush.msra.mxu2 %v1613_v50 }
 0x507   :  { %617 = vmatmul.f32.vlgmr.msrb.gmra.mxu2 %v616_v7  ;;  %718 = vmatmul.f32.vlgmr.msrb.gmra.mxu3 %v612_v54 }
 0x508   :  { %766 = vmatpush.msra.mxu0 %v2052_v12  ;;  %1086 = vmatpush.msk.msra.mxu3 %vm1556_vm5, %v2042_v15 }
 0x509   :  { %1066 = vmatpush.msk.msra.mxu1 %vm1551_vm4, %v2042_v15  ;;  %870 = vmatpush.msra.mxu2 %v1676_v0 }
 0x50a   :  { %769 = vmatpush.msra.mxu0 %v1709_v23  ;;  %1087 = vmatpush.msk.msra.mxu3 %vm1689_vm6, %v2042_v15 }
 0x50b   :  { %1067 = vmatpush.msk.msra.mxu1 %vm1482_vm2, %v2042_v15  ;;  %874 = vmatpush.msra.mxu2 %v1663_v53 }
 0x50c   :  { %772 = vmatmul.f32.vlgmr.msra.gmra.mxu0 %v613_v52 }
 0x50d   :  { %1068 = vmatpush.msk.msra.mxu1 %vm1495_vm3, %v2042_v15  ;;  %878 = vmatpush.msra.mxu2 %v1715_v37 }
 0x50f   :  { %1069 = vmatpush.msk.msra.mxu1 %vm1632_vm7, %v2042_v15  ;;  %880 = vmatmul.f32.vlgmr.msra.gmra.mxu2 %v612_v54 }
 0x510   :  { %917 = vmatmul.f32.vlgmr.msra.gmra.mxu3 %v612_v54 }
 0x511   :  { %1070 = vmatpush.msk.msra.mxu1 %vm1556_vm5, %v2042_v15 }
 0x513   :  { %1071 = vmatpush.msk.msra.mxu1 %vm1689_vm6, %v2042_v15 }
 0x514   :  { %811 = vmatmul.f32.vlgmr.msra.gmra.mxu1 %v614_v61 }
 0x545   :  { %v265_v53 = vpop.f32.mrf.mxu0 }
 0x54f   :  { %v459_v18 = vpop.f32.mrf.mxu3 }
 0x567   :  { %v366_v14 = vpop.f32.mrf.mxu1 }
 0x568   :  { %v367_v16 = vadd.f32 %v366_v14, %v265_v53  ;;  %v420_v17 = vpop.f32.mrf.mxu2 }
 0x56a   :  { %v421_v20 = vadd.f32 %v420_v17, %v367_v16 }
 0x56c   :  { %v460_v21 = vadd.f32 %v459_v18, %v421_v20 }
 0x56e   :  { %v528_v22 = vpop.f32.mrf.mxu0 }
 0x56f   :  { %v529_v24 = vadd.f32 %v528_v22, %v460_v21 }
 0x570   :  { %v565_v25 = vpop.f32.mrf.mxu1 }
 0x571   :  { %v566_v28 = vadd.f32 %v565_v25, %v529_v24 }
 0x573   :  { %v1090_v31 = vcvt.f32.s32 %v566_v28 }
 0x575   :  { %v569_v34 = vmul.u32 65536, %v1090_v31  ;;  %v570_v35 = vrot.slane %v1090_v31, 2 }
 0x577   :  { %v571_v39 = vadd.s32 %v570_v35, %v569_v34 }
 0x579   :  { %v577_v41 = vsel %vm576_vm8, %v571_v39, 4294967295 }
 0x57a   :  { %578 = vst [vmem:[#allocation7] sm:$0x3] %v577_v41 }
 0x57b   :  { %936 = dma.vmem_to_hbm [thread:$0]  %s932_s6, 32, %s934_s9, [#allocation4]  }
 0x589   :  { %v773_v47 = vpop.f32.mrf.mxu0 }
 0x58a   :  { %v618_v43 = vpop.f32.mrf.mxu2  ;;  %v719_v44 = vpop.f32.mrf.mxu3 }
 0x58b   :  { %v720_v46 = vadd.f32 %v719_v44, %v618_v43 }
 0x58d   :  { %v774_v51 = vadd.f32 %v773_v47, %v720_v46 }
 0x591   :  { %v812_v58 = vpop.f32.mrf.mxu1 }
 0x592   :  { %v813_v9 = vadd.f32 %v812_v58, %v774_v51  ;;  %v881_v10 = vpop.f32.mrf.mxu2 }
 0x593   :  { %v918_v1 = vpop.f32.mrf.mxu3 }
 0x594   :  { %v882_v13 = vadd.f32 %v881_v10, %v813_v9 }
 0x596   :  { %v919_v15 = vadd.f32 %v918_v1, %v882_v13 }
 0x598   :  { %921 = vst [vmem:[#allocation8] sm:$0xff] %v919_v15 }
 0x599   :  { %947 = dma.vmem_to_hbm [thread:$0]  %s943_s11, 128, %s945_s13, [#allocation9]  }
 0x59a   :  { %958 = dma.vmem_to_hbm [thread:$0]  %s954_s15, 16, %s956_s18, [#allocation9]  }
 0x59b   :  { %1237 = dma.done.wait [#allocation4], 32  }
 0x59c   :  { %1238 = vsyncadd [#allocation4], 4294967264 }
 0x59d   :  { %1239 = dma.done.wait [#allocation9], 144  }
 0x59e   :  { %1240 = vsyncadd [#allocation9], 4294967152 }
 0x59f   :  { %971 = vsyncpa [#allocation3], 1 }
 0x5a0   :  { %972 = vsyncpa [#allocation6], 1 }
 0x5a1   :  { %973 = vsyncpa [#allocation4], 1 }
 0x5a2   :  { %974 = vsyncpa [#allocation9], 1 }

</bundles_post_ra>
